<compile_context>
chip_gen: v7x
topology: tpu7x:2x2x1
jax: 0.10.0
libtpu: 0.0.40
codegen_flags: <defaults>
</compile_context>

<pallas_src>
import functools

import jax
import jax.numpy as jnp
from jax import lax
from jax.experimental import pallas as pl
from jax.experimental.pallas import tpu as pltpu


# ----------------------------------------------------------------------------
# Kernel 1: fused vision feature extractor + visual_embedding
#   per image:  feat = mean_{hw} ReLU( x[:, hw] . conv_w + conv_b )   (1, F)
#               emb  = tanh( feat @ ve_w + ve_b )                     (1, E)
# ----------------------------------------------------------------------------
def vision_embed_kernel(x_ref, cw_ref, cb_ref, vw_ref, vb_ref, o_ref, acc_ref,
                        *, inv_hw):
    # x_ref:  (1, C, HWT)   cw_ref: (C, F)   cb_ref: (1, F)
    # vw_ref: (F, E)        vb_ref: (1, E)
    # o_ref:  (1, 1, E)     acc_ref: (1, F) f32 scratch (pooled-sum accumulator)
    hw_idx = pl.program_id(1)

    @pl.when(hw_idx == 0)
    def _():
        acc_ref[...] = jnp.zeros_like(acc_ref)

    x = x_ref[0]                                       # (C, HWT), lane-dense HW
    # 1x1 conv == contraction over C: (C, HWT) x (C, F) -> (HWT, F).
    # (K = C is tiny so the MXU reduction is padded; at these sizes the stage
    #  is launch/DMA-latency bound, not MXU bound.)
    y = lax.dot_general(x, cw_ref[...],
                        dimension_numbers=(((0,), (0,)), ((), ())),
                        preferred_element_type=jnp.float32)          # (HWT, F)
    y = jnp.maximum(y + cb_ref[...], 0.0)                            # ReLU
    acc_ref[...] += jnp.sum(y, axis=0, keepdims=True)                # partial pool

    @pl.when(hw_idx == pl.num_programs(1) - 1)
    def _():
        feat = acc_ref[...] * inv_hw                                 # mean pool
        emb = jnp.tanh(
            jnp.dot(feat, vw_ref[...], preferred_element_type=jnp.float32)
            + vb_ref[...])                                           # (1, E)
        o_ref[0] = emb


def _pick_hw_tile(hw, max_tile):
    """Largest multiple-of-128 divisor of hw that is <= max_tile (or hw itself)."""
    if hw <= max_tile:
        return hw
    t = max_tile - (max_tile % 128)
    while t >= 128:
        if hw % t == 0:
            return t
        t -= 128
    return hw


def vision_embed(x_nchw, conv_w, conv_b, ve_w, ve_b, *, max_hw_tile=2048):
    """(N, C, H, W) -> (N, embDim): tanh(ve(avgpool(relu(1x1 conv))))."""
    N, C, H, W = x_nchw.shape
    HW = H * W
    F = conv_w.shape[1]
    E = ve_w.shape[1]
    x = x_nchw.reshape(N, C, HW)          # free reshape of NCHW, no HBM transpose
    # NOTE: on v7x (64 MiB VMEM / TC) prefer a smaller max_hw_tile than v5e/v6e.
    hwt = _pick_hw_tile(HW, max_hw_tile)
    n_hw = HW // hwt

    out = pl.pallas_call(
        functools.partial(vision_embed_kernel, inv_hw=1.0 / float(HW)),
        out_shape=jax.ShapeDtypeStruct((N, 1, E), jnp.float32),
        grid=(N, n_hw),
        in_specs=[
            pl.BlockSpec((1, C, hwt), lambda n, h: (n, 0, h)),
            pl.BlockSpec((C, F), lambda n, h: (0, 0)),
            pl.BlockSpec((1, F), lambda n, h: (0, 0)),
            pl.BlockSpec((F, E), lambda n, h: (0, 0)),
            pl.BlockSpec((1, E), lambda n, h: (0, 0)),
        ],
        out_specs=pl.BlockSpec((1, 1, E), lambda n, h: (n, 0, 0)),
        scratch_shapes=[pltpu.VMEM((1, F), jnp.float32)],
        compiler_params=pltpu.CompilerParams(
            dimension_semantics=("parallel", "arbitrary")),
    )(x, conv_w, conv_b, ve_w, ve_b)
    return out.reshape(N, E)


# ----------------------------------------------------------------------------
# Kernel 2: fused stRNN LSTM + ingr_embedding + recipe_embedding
# ----------------------------------------------------------------------------
def recipe_kernel(x_ref, len_ref, ci_ref, wih_ref, whh_ref, b_ref,
                  iew_ref, ieb_ref, rew_ref, reb_ref, o_ref, *, T, B, E):
    # x_ref:   (T*B, E)  time-major flattened instructions (row = t*B + b)
    # len_ref: (B, E)    int32 sequence lengths broadcast across E
    # ci_ref:  (B, NI*E) concatenated per-ingredient visual embeddings
    # wih/whh: (E, 4E)   b_ref: (1, 4E)  (= b_ih + b_hh, PyTorch gate order i,f,g,o)
    # iew_ref: (NI*E, E) ieb_ref: (1, E)
    # rew_ref: (2E, E)   reb_ref: (1, E)
    # o_ref:   (B, E)    recipe embedding

    # Hoisted LSTM input projection: one MXU pass over every timestep.
    gx = jnp.dot(x_ref[...], wih_ref[...],
                 preferred_element_type=jnp.float32) + b_ref[...]    # (T*B, 4E)

    h = jnp.zeros((B, E), jnp.float32)
    c = jnp.zeros((B, E), jnp.float32)
    inst = jnp.zeros((B, E), jnp.float32)
    lens = len_ref[...]

    # Statically unrolled recurrence: only h @ W_hh sits on the serial path.
    # TODO(synk): lengths of 0 or > T leave an all-zero output row (same as the
    #             PyTorch pack/unpack path never selecting a valid step).
    for t in range(T):
        gates = gx[t * B:(t + 1) * B, :] + jnp.dot(
            h, whh_ref[...], preferred_element_type=jnp.float32)     # (B, 4E)
        i = jax.nn.sigmoid(gates[:, 0 * E:1 * E])
        f = jax.nn.sigmoid(gates[:, 1 * E:2 * E])
        g = jnp.tanh(gates[:, 2 * E:3 * E])
        o = jax.nn.sigmoid(gates[:, 3 * E:4 * E])
        c = f * c + i * g
        h = o * jnp.tanh(c)
        inst = jnp.where(lens == (t + 1), h, inst)   # capture h at t = len - 1

    # ingr_embedding(concat_ingr)
    ingr = jnp.tanh(
        jnp.dot(ci_ref[...], iew_ref[...], preferred_element_type=jnp.float32)
        + ieb_ref[...])                                              # (B, E)

    # recipe_embedding(cat([ingr, inst], dim=1)) == two dots on re_w halves.
    rec = (jnp.dot(ingr, rew_ref[0:E, :], preferred_element_type=jnp.float32)
           + jnp.dot(inst, rew_ref[E:2 * E, :], preferred_element_type=jnp.float32)
           + reb_ref[...])
    o_ref[...] = jnp.tanh(rec)


def recipe_branch(concat_ingr, instrs, lengths, params):
    """concat_ingr: (B, NI*E), instrs: (B, T, E), lengths: (B,) -> (B, E)."""
    B, T, E = instrs.shape
    x_flat = jnp.transpose(instrs, (1, 0, 2)).reshape(T * B, E)      # time-major
    len_be = jnp.broadcast_to(lengths.reshape(B, 1).astype(jnp.int32), (B, E))
    # No grid: whole (tiny) operands live in VMEM for the single invocation.
    return pl.pallas_call(
        functools.partial(recipe_kernel, T=T, B=B, E=E),
        out_shape=jax.ShapeDtypeStruct((B, E), jnp.float32),
    )(x_flat, len_be, concat_ingr,
      params["lstm_wih"], params["lstm_whh"], params["lstm_b"],
      params["ie_w"], params["ie_b"], params["re_w"], params["re_b"])


# ----------------------------------------------------------------------------
# Parameter initialization (deterministic, synthetic)
# ----------------------------------------------------------------------------
def init_params(key, *, C, imfeatDim, embDim, num_ingr):
    ks = jax.random.split(key, 12)
    s = 0.02

    def nrm(k, shape):
        return (s * jax.random.normal(k, shape)).astype(jnp.float32)

    return {
        # simplified visionMLP: 1x1 conv C -> imfeatDim
        "conv_w": nrm(ks[0], (C, imfeatDim)),
        "conv_b": nrm(ks[1], (1, imfeatDim)),
        # visual_embedding: Linear(imfeatDim, embDim) + Tanh
        "ve_w": nrm(ks[2], (imfeatDim, embDim)),
        "ve_b": nrm(ks[3], (1, embDim)),
        # ingr_embedding: Linear(embDim * num_ingr, embDim) + Tanh
        "ie_w": nrm(ks[4], (embDim * num_ingr, embDim)),
        "ie_b": nrm(ks[5], (1, embDim)),
        # stRNN LSTM(embDim, embDim), gate order (i, f, g, o), b = b_ih + b_hh
        "lstm_wih": nrm(ks[6], (embDim, 4 * embDim)),
        "lstm_whh": nrm(ks[7], (embDim, 4 * embDim)),
        "lstm_b": nrm(ks[8], (1, 4 * embDim)),
        # recipe_embedding: Linear(2 * embDim, embDim) + Tanh
        "re_w": nrm(ks[9], (2 * embDim, embDim)),
        "re_b": nrm(ks[10], (1, embDim)),
    }


# ----------------------------------------------------------------------------
# img2img forward
# ----------------------------------------------------------------------------
def img2img_forward(params, dish_img, ingr_imgs, instrs, itr_ln):
    B = dish_img.shape[0]
    bsz, num_ingr, c, h, w = ingr_imgs.shape

    # One fused vision+visual_embedding call over dish + ingredient images.
    all_imgs = jnp.concatenate([dish_img, ingr_imgs.reshape(-1, c, h, w)], axis=0)
    all_embs = vision_embed(all_imgs, params["conv_w"], params["conv_b"],
                            params["ve_w"], params["ve_b"])          # (B+B*NI, E)

    dish_emb = all_embs[:B]                                          # (B, E)
    concat_ingr = all_embs[B:].reshape(bsz, -1)                      # (B, NI*E)

    # Fused LSTM + ingr_embedding + recipe_embedding.
    recipe_emb = recipe_branch(concat_ingr, instrs, itr_ln, params)  # (B, E)

    return [dish_emb, recipe_emb]


# ----------------------------------------------------------------------------
# Main
# ----------------------------------------------------------------------------
if __name__ == "__main__":
    B, NUM_INGR, C, H, W = 2, 4, 3, 16, 16
    IMFEAT, EMB, T = 256, 128, 6

    key = jax.random.PRNGKey(0)
    kp, k1, k2, k3 = jax.random.split(key, 4)

    params = init_params(kp, C=C, imfeatDim=IMFEAT, embDim=EMB, num_ingr=NUM_INGR)

    dish_img = jax.random.normal(k1, (B, C, H, W), dtype=jnp.float32)
    ingr_imgs = jax.random.normal(k2, (B, NUM_INGR, C, H, W), dtype=jnp.float32)
    instrs = jax.random.normal(k3, (B, T, EMB), dtype=jnp.float32)
    itr_ln = jnp.array([6, 4], dtype=jnp.int32)

    dish_emb, recipe_emb = img2img_forward(params, dish_img, ingr_imgs, instrs, itr_ln)
    jax.block_until_ready((dish_emb, recipe_emb))

    assert dish_emb.shape == (B, EMB), dish_emb.shape
    assert recipe_emb.shape == (B, EMB), recipe_emb.shape
    assert bool(jnp.all(jnp.isfinite(dish_emb))) and bool(jnp.all(jnp.isfinite(recipe_emb)))

    print("KERNEL_OK")
</pallas_src>

<mosaic_0001>
module attributes {stable_mosaic.version = 11 : i64} {
  func.func @vision_embed_kernel(%arg0: i32, %arg1: i32, %arg2: memref<1x3x256xf32, #tpu.memory_space<vmem>>, %arg3: memref<3x256xf32, #tpu.memory_space<vmem>>, %arg4: memref<1x256xf32, #tpu.memory_space<vmem>>, %arg5: memref<256x128xf32, #tpu.memory_space<vmem>>, %arg6: memref<1x128xf32, #tpu.memory_space<vmem>>, %arg7: memref<1x1x128xf32, #tpu.memory_space<vmem>>, %arg8: memref<1x256xf32, #tpu.memory_space<vmem>>) attributes {dimension_semantics = [#tpu.dimension_semantics<parallel>, #tpu.dimension_semantics<arbitrary>], iteration_bounds = array<i64: 10, 1>, scalar_prefetch = 0 : i64, scratch_operands = 1 : i64, tpu.core_type = #tpu.core_type<tc>, window_params = [{transform_indices = @transform_0, window_bounds = array<i64: 1, 3, 256>}, {pipeline_mode = #tpu.pipeline_mode<synchronous>, transform_indices = @transform_1, window_bounds = array<i64: 3, 256>}, {pipeline_mode = #tpu.pipeline_mode<synchronous>, transform_indices = @transform_2, window_bounds = array<i64: 1, 256>}, {pipeline_mode = #tpu.pipeline_mode<synchronous>, transform_indices = @transform_3, window_bounds = array<i64: 256, 128>}, {pipeline_mode = #tpu.pipeline_mode<synchronous>, transform_indices = @transform_4, window_bounds = array<i64: 1, 128>}, {transform_indices = @transform_5, window_bounds = array<i64: 1, 1, 128>}]} {
    %c0_i32 = arith.constant 0 : i32
    %0 = arith.cmpi eq, %arg1, %c0_i32 : i32
    %1 = arith.extui %0 : i1 to i32
    %c0_i32_0 = arith.constant 0 : i32
    %2 = arith.cmpi ne, %1, %c0_i32_0 : i32
    scf.if %2 {
      %cst_15 = arith.constant 0.000000e+00 : f32
      %20 = vector.broadcast %cst_15 : f32 to vector<1x256xf32>
      %c0_16 = arith.constant 0 : index
      %c0_17 = arith.constant 0 : index
      %21 = vector.load %arg8[%c0_16, %c0_17] : memref<1x256xf32, #tpu.memory_space<vmem>>, vector<1x256xf32>
      tpu.vector_store %arg8[%c0_16, %c0_17], %20 {strides = array<i32>} : memref<1x256xf32, #tpu.memory_space<vmem>>, vector<1x256xf32>,
    } else {
    }
    %c0 = arith.constant 0 : index
    %c0_1 = arith.constant 0 : index
    %c0_2 = arith.constant 0 : index
    %3 = vector.load %arg2[%c0, %c0_1, %c0_2] : memref<1x3x256xf32, #tpu.memory_space<vmem>>, vector<1x3x256xf32>
    %4 = vector.shape_cast %3 : vector<1x3x256xf32> to vector<3x256xf32>
    %c0_3 = arith.constant 0 : index
    %c0_4 = arith.constant 0 : index
    %5 = vector.load %arg3[%c0_3, %c0_4] : memref<3x256xf32, #tpu.memory_space<vmem>>, vector<3x256xf32>
    %cst = arith.constant dense<0.000000e+00> : vector<256x256xf32>
    %6 = tpu.matmul %4, %5, %cst {dimension_numbers = #tpu.dot_dimension_numbers<[0], [0], [1], [1], [0, 1, 1, 1], [], []>} : vector<3x256xf32>, vector<3x256xf32>, vector<256x256xf32> -> vector<256x256xf32>
    %c0_5 = arith.constant 0 : index
    %c0_6 = arith.constant 0 : index
    %7 = vector.load %arg4[%c0_5, %c0_6] : memref<1x256xf32, #tpu.memory_space<vmem>>, vector<1x256xf32>
    %8 = vector.broadcast %7 : vector<1x256xf32> to vector<256x256xf32>
    %9 = arith.addf %6, %8 : vector<256x256xf32>
    %cst_7 = arith.constant 0.000000e+00 : f32
    %10 = vector.broadcast %cst_7 : f32 to vector<256x256xf32>
    %11 = arith.maximumf %9, %10 : vector<256x256xf32>
    %c0_8 = arith.constant 0 : index
    %c0_9 = arith.constant 0 : index
    %12 = vector.load %arg8[%c0_8, %c0_9] : memref<1x256xf32, #tpu.memory_space<vmem>>, vector<1x256xf32>
    %cst_10 = arith.constant dense<0.000000e+00> : vector<256xf32>
    %13 = vector.multi_reduction <add>, %11, %cst_10 [0] : vector<256x256xf32> to vector<256xf32>
    %14 = vector.shape_cast %13 : vector<256xf32> to vector<1x256xf32>
    %15 = arith.addf %12, %14 : vector<1x256xf32>
    %c0_11 = arith.constant 0 : index
    %c0_12 = arith.constant 0 : index
    %16 = vector.load %arg8[%c0_11, %c0_12] : memref<1x256xf32, #tpu.memory_space<vmem>>, vector<1x256xf32>
    tpu.vector_store %arg8[%c0_11, %c0_12], %15 {strides = array<i32>} : memref<1x256xf32, #tpu.memory_space<vmem>>, vector<1x256xf32>,
    %c0_i32_13 = arith.constant 0 : i32
    %17 = arith.cmpi eq, %arg1, %c0_i32_13 : i32
    %18 = arith.extui %17 : i1 to i32
    %c0_i32_14 = arith.constant 0 : i32
    %19 = arith.cmpi ne, %18, %c0_i32_14 : i32
    scf.if %19 {
      %c0_15 = arith.constant 0 : index
      %c0_16 = arith.constant 0 : index
      %20 = vector.load %arg8[%c0_15, %c0_16] : memref<1x256xf32, #tpu.memory_space<vmem>>, vector<1x256xf32>
      %cst_17 = arith.constant 3.906250e-03 : f32
      %21 = vector.broadcast %cst_17 : f32 to vector<1x256xf32>
      %22 = arith.mulf %20, %21 : vector<1x256xf32>
      %c0_18 = arith.constant 0 : index
      %c0_19 = arith.constant 0 : index
      %23 = vector.load %arg5[%c0_18, %c0_19] : memref<256x128xf32, #tpu.memory_space<vmem>>, vector<256x128xf32>
      %cst_20 = arith.constant dense<0.000000e+00> : vector<1x128xf32>
      %24 = tpu.matmul %22, %23, %cst_20 {dimension_numbers = #tpu.dot_dimension_numbers<[1], [0], [0], [1], [0, 0, 1, 1], [], []>} : vector<1x256xf32>, vector<256x128xf32>, vector<1x128xf32> -> vector<1x128xf32>
      %c0_21 = arith.constant 0 : index
      %c0_22 = arith.constant 0 : index
      %25 = vector.load %arg6[%c0_21, %c0_22] : memref<1x128xf32, #tpu.memory_space<vmem>>, vector<1x128xf32>
      %26 = arith.addf %24, %25 : vector<1x128xf32>
      %27 = math.tanh %26 : vector<1x128xf32>
      %c0_23 = arith.constant 0 : index
      %c0_24 = arith.constant 0 : index
      %c0_25 = arith.constant 0 : index
      %28 = vector.load %arg7[%c0_23, %c0_24, %c0_25] : memref<1x1x128xf32, #tpu.memory_space<vmem>>, vector<1x1x128xf32>
      %29 = vector.shape_cast %28 : vector<1x1x128xf32> to vector<1x128xf32>
      %30 = vector.shape_cast %27 : vector<1x128xf32> to vector<1x1x128xf32>
      tpu.vector_store %arg7[%c0_23, %c0_24, %c0_25], %30 {strides = array<i32>} : memref<1x1x128xf32, #tpu.memory_space<vmem>>, vector<1x1x128xf32>,
    } else {
    }
    return
  }
  func.func @transform_0(%arg0: i32, %arg1: i32) -> (i32, i32, i32) {
    %c0_i32 = arith.constant 0 : i32
    %c0_i32_0 = arith.constant 0 : i32
    return %arg0, %c0_i32, %arg1 : i32, i32, i32
  }
  func.func @transform_1(%arg0: i32, %arg1: i32) -> (i32, i32) {
    %c0_i32 = arith.constant 0 : i32
    %c0_i32_0 = arith.constant 0 : i32
    %c0_i32_1 = arith.constant 0 : i32
    return %c0_i32, %c0_i32_0 : i32, i32
  }
  func.func @transform_2(%arg0: i32, %arg1: i32) -> (i32, i32) {
    %c0_i32 = arith.constant 0 : i32
    %c0_i32_0 = arith.constant 0 : i32
    %c0_i32_1 = arith.constant 0 : i32
    return %c0_i32, %c0_i32_0 : i32, i32
  }
  func.func @transform_3(%arg0: i32, %arg1: i32) -> (i32, i32) {
    %c0_i32 = arith.constant 0 : i32
    %c0_i32_0 = arith.constant 0 : i32
    %c0_i32_1 = arith.constant 0 : i32
    return %c0_i32, %c0_i32_0 : i32, i32
  }
  func.func @transform_4(%arg0: i32, %arg1: i32) -> (i32, i32) {
    %c0_i32 = arith.constant 0 : i32
    %c0_i32_0 = arith.constant 0 : i32
    %c0_i32_1 = arith.constant 0 : i32
    return %c0_i32, %c0_i32_0 : i32, i32
  }
  func.func @transform_5(%arg0: i32, %arg1: i32) -> (i32, i32, i32) {
    %c0_i32 = arith.constant 0 : i32
    %c0_i32_0 = arith.constant 0 : i32
    %c0_i32_1 = arith.constant 0 : i32
    return %arg0, %c0_i32, %c0_i32_0 : i32, i32, i32
  }
}

</mosaic_0001>

<bundles_post_ra>
// kernel: tpu_custom_call.1
= control target key start
LH: loop header
LB: loop body
LE: loop exit
PB: predicated region body
PF: predicated region fallthrough
CT: control target
= control target key end

     0   :  { %10 = vsyncpa [#allocation4], 0  ;;  %s1953_s0 = inlined_call_operand.hbm [shape: f32[10,3,256], index: 0, kind: input, shape index: {}]   ;;  %s1954_s1 = inlined_call_operand.hbm [shape: f32[3,256], index: 1, kind: input, shape index: {}]   ;;  %s1955_s2 = inlined_call_operand.vmem [shape: f32[1,256], index: 2, kind: input, shape index: {}]   ;;  %s1956_s3 = inlined_call_operand.hbm [shape: f32[256,128], index: 3, kind: input, shape index: {}]   ;;  %s1957_s4 = inlined_call_operand.vmem [shape: f32[1,128], index: 4, kind: input, shape index: {}]   ;;  %s1958_s5 = inlined_call_operand.hbm [shape: f32[10,1,128], index: 5, kind: output, shape index: {}]  }
   0x1   :  { %12 = vsyncpa [#allocation4 + $0x1], 0 }
   0x2   :  { %13 = vsyncpa [#allocation7], 0 }
   0x3   :  { %14 = vsyncpa [#allocation5], 0 }
   0x4   :  { %16 = vsyncpa [#allocation5 + $0x1], 0  ;;  %s1551_s18 = smov 0   ;;  %s1553_s19 = smov 0  }
   0x5   :  { %s1555_s20 = smov 0   ;;  %s1557_s21 = smov 0  }
   0x6   :  { %s1559_s22 = smov 0   ;;  %s1561_s23 = smov 0  }
   0x7 LB: > { %s1128_s24 = sadd.s32 4294967295, %s1511_s23   ;;  %s1129_s25 = sadd.s32 4294967294, %s1511_s23   ;;  %s1511_s23 = sphi %s1561_s23, %s22_s23   ;;  %s1507_s22 = sphi %s1559_s22, %s1982_s22   ;;  %s1503_s21 = sphi %s1557_s21, %s1981_s21   ;;  %s1499_s20 = sphi %s1555_s20, %s1980_s20   ;;  %s1495_s19 = sphi %s1553_s19, %s1979_s19   ;;  %s1491_s18 = sphi %s1551_s18, %s1978_s18  }
   0x8   : > { %p56_p0 = scmp.ne.s32.totalorder %s1495_s19, %s1491_s18  ;;  %p1585_p1 = scmp.eq.s32.totalorder %s1128_s24, 0 }
   0x9   : > { %p1589_p2 = scmp.eq.s32.totalorder %s1128_s24, 9  ;;  %p170_p3 = scmp.eq.s32.totalorder %s1129_s25, 9 }
   0xa   : > { %s1963_s26 = scalar_select %p1585_p1, 1, 0 }
   0xb   : > { %s1964_s27 = scalar_select %p1589_p2, 1, 0 }
   0xc   : > { %p1595_p4 = por %p1585_p1, %p56_p0  ;;  %p1130_p5 = scmp.ge.s32.totalorder %s1511_s23, 1 }
   0xd   : > { %p1600_p6 = por %p170_p3, %p56_p0  ;;  %p177_p7 = scmp.lt.s32.totalorder %s1511_s23, 11 }
   0xe   : > { %s1965_s28 = scalar_select %p1595_p4, 1, 0 }
   0xf   : > { %s1966_s29 = scalar_select %p1600_p6, 1, 0 }
  0x10   : > { %p1605_p8 = pnand %p1130_p5, %p177_p7  ;;  %s1513_s6 = smov [#allocation6]  }
  0x11   : > { %s190_s7 = sshll.u32 %s1513_s6, 4  ;;  %s1514_s8 = smov [#allocation8]   ;;  %s191_s7 = int_to_ptr.vmem [resolvable:$true] %s190_s7 }
  0x12   : > { %s1967_s30 = scalar_select %p1605_p8, 1, 0 }
  0x13   : > { %p1260_p9 = pneg %p1605_p8  ;;  %s203_s9 = sshll.u32 %s1514_s8, 4  ;;  %s1617_s9 = int_to_ptr.vmem [resolvable:$true] %s203_s9 }
  0x14   : > { %s1339_s13 = scalar_lea.hbm %s1954_s1, 128 }
  0x15   : > { %p1613_p10 = pnand %p1260_p9, %p1585_p1  ;;  %p1340_p11 = scmp.ne.s32.totalorder %s1954_s1, %s1339_s13 }
  0x16   : > { %p1346_p3 = scmp.lt.u32.totalorder %s1339_s13, %s1954_s1 }
  0x17   : > { %p1341_p12 = pneg %p1613_p10 }
  0x19   : > { %p1342_p13 = pnand %p1341_p12, %p1340_p11 }
  0x1b   : > { %p1343_p0 = pneg %p1342_p13 }
  0x1d   : > { %p1348_p5 = pnand %p1346_p3, %p1343_p0 }
  0x1f   : > { %1351 = shalt.err (!%p1348_p5)
}
  0x20   : > { %s1352_s24 = scalar_lea.vmem %s191_s7, 128  ;;  %p1360_p1 = scmp.lt.s32.totalorder %s191_s7, %s191_s7 }
  0x21   : > { %p1353_p7 = scmp.ne.s32.totalorder %s191_s7, %s1352_s24  ;;  %p1361_p4 = scmp.lt.s32.totalorder %s1352_s24, %s1352_s24 }
  0x23   : > { %p1355_p9 = pnand %p1353_p7, %p1341_p12  ;;  %p1362_p8 = por %p1361_p4, %p1360_p1 }
  0x25   : > { %p1356_p6 = pneg %p1355_p9 }
  0x27   : > { %p1363_p2 = pnand %p1362_p8, %p1356_p6 }
  0x29   : > { %1366 = shalt.err (!%p1363_p2)
}
  0x2a   : > { %1263 = dma.hbm_to_vmem [thread:$0]  (!%p1613_p10), %s1954_s1, 128, %s191_s7, [#allocation7]  }
  0x2b   : > { %s1367_s12 = scalar_lea.hbm %s1956_s3, 4096 }
  0x2c   : > { %p1368_p11 = scmp.ne.s32.totalorder %s1956_s3, %s1367_s12  ;;  %p1374_p2 = scmp.lt.u32.totalorder %s1367_s12, %s1956_s3 }
  0x2e   : > { %p1370_p1 = pnand %p1368_p11, %p1341_p12 }
  0x30   : > { %p1371_p4 = pneg %p1370_p1 }
  0x32   : > { %p1376_p6 = pnand %p1374_p2, %p1371_p4 }
  0x34   : > { %1379 = shalt.err (!%p1376_p6)
}
  0x35   : > { %s1380_s7 = scalar_lea.vmem %s1617_s9, 4096  ;;  %p1388_p3 = scmp.lt.s32.totalorder %s1617_s9, %s1617_s9 }
  0x36   : > { %p1381_p8 = scmp.ne.s32.totalorder %s1617_s9, %s1380_s7  ;;  %p1389_p5 = scmp.lt.s32.totalorder %s1380_s7, %s1380_s7 }
  0x38   : > { %p1383_p13 = pnand %p1381_p8, %p1341_p12  ;;  %p1390_p7 = por %p1389_p5, %p1388_p3 }
  0x3a   : > { %p1384_p0 = pneg %p1383_p13 }
  0x3c   : > { %p1391_p9 = pnand %p1390_p7, %p1384_p0 }
  0x3e   : > { %1394 = shalt.err (!%p1391_p9)
}
  0x3f   : > { %s1515_s17 = smov 128   ;;  %s1516_s24 = smov 8  }
  0x40   : > { %1266 = dma.hbm_to_vmem [thread:$0]  (!%p1613_p10), %s1956_s3, 4096, %s1617_s9, [#allocation7], %s1515_s17, %s1515_s17, %s1516_s24  }
  0x41   : > { %s34_s8 = sadd.s32 1, %s1507_s22  ;;  %s43_s11 = sadd.s32 1, %s1499_s20 }
  0x42   : > { %p36_p12 = scmp.ge.s32.totalorder %s34_s8, 10  ;;  %p50_p11 = scmp.ne.s32.totalorder %s1499_s20, %s1495_s19 }
  0x43   : > { %p51_p1 = scmp.eq.s32.totalorder %s1511_s23, 0  ;;  %p1277_p4 = scmp.lt.s32.totalorder %s1511_s23, 10 }
  0x44   : > { %s1984_s8 = smov (%p36_p12, %s34_s8), 0  ;;  %p1969_p6 = scmp.ne.s32.totalorder %s1964_s27, 0 }
  0x45   : > { %p52_p2 = por %p51_p1, %p50_p11  ;;  %s38_s10 = ssub.s32 %s1507_s22, %s1984_s8 }
  0x46   : > { %p1676_p8 = por %p1969_p6, %p50_p11  ;;  %s220_s13 = sand.u32 1, %s1499_s20  }
  0x47   : > { %p41_p13 = scmp.eq.s32.totalorder %s38_s10, 0  ;;  %s1134_s9 = sshll.u32 %s220_s13, 3 }
  0x48   : > { %s1178_s14 = sshll.u32 %s1507_s22, 7  ;;  %s224_s27 = scalar_lea.vmem [#allocation3], %s1134_s9 }
  0x49   : > { %s1685_s15 = scalar_select %p41_p13, %s1499_s20, %s43_s11  }
  0x4a   : > { %s1690_s17 = scalar_lea.hbm %s1953_s0, %s1178_s14  ;;  %s234_s24 = sshll.u32 %s224_s27, 4  ;;  %s1698_s24 = int_to_ptr.vmem [resolvable:$true] %s234_s24 }
  0x4b   : > { %p1694_p10 = pnand %p1277_p4, %p52_p2  ;;  %s221_s6 = scalar_lea.sflag [#allocation4], %s220_s13 }
  0x4c   : > { %s1395_s11 = scalar_lea.hbm %s1690_s17, 128  ;;  %s1400_s14 = scalar_lea.hbm %s1953_s0, 1280 }
  0x4d   : > { %p1396_p0 = scmp.ne.s32.totalorder %s1690_s17, %s1395_s11  ;;  %p1397_p3 = pneg %p1694_p10 }
  0x4e   : > { %p1401_p9 = scmp.lt.u32.totalorder %s1690_s17, %s1953_s0  ;;  %p1402_p12 = scmp.lt.u32.totalorder %s1400_s14, %s1395_s11 }
  0x4f   : > { %p1398_p5 = pnand %p1397_p3, %p1396_p0  ;;  %p1404_p1 = scmp.lt.u32.totalorder %s1395_s11, %s1690_s17 }
  0x50   : > { %p1403_p11 = por %p1402_p12, %p1401_p9 }
  0x51   : > { %p1399_p7 = pneg %p1398_p5 }
  0x52   : > { %p1405_p4 = por %p1404_p1, %p1403_p11 }
  0x54   : > { %p1406_p2 = pnand %p1405_p4, %p1399_p7 }
  0x56   : > { %1409 = shalt.err (!%p1406_p2)
}
  0x57   : > { %s1410_s13 = scalar_lea.vmem %s1698_s24, 128  ;;  %s1517_s27 = smov [#allocation3]  }
  0x58   : > { %p1411_p6 = scmp.ne.s32.totalorder %s1698_s24, %s1410_s13  ;;  %s1415_s10 = sshll.u32 %s1517_s27, 4  ;;  %s1416_s10 = int_to_ptr.vmem [resolvable:$false] %s1415_s10 }
  0x59   : > { %s1417_s9 = scalar_lea.vmem %s1416_s10, 256  ;;  %p1418_p5 = scmp.lt.s32.totalorder %s1698_s24, %s1416_s10 }
  0x5a   : > { %p1413_p13 = pnand %p1411_p6, %p1397_p3  ;;  %p1419_p9 = scmp.lt.s32.totalorder %s1417_s9, %s1410_s13 }
  0x5c   : > { %p1414_p0 = pneg %p1413_p13  ;;  %p1420_p12 = por %p1419_p9, %p1418_p5 }
  0x5e   : > { %p1421_p11 = pnand %p1420_p12, %p1414_p0 }
  0x60   : > { %1424 = shalt.err (!%p1421_p11)
}
  0x61   : > { %1270 = dma.hbm_to_vmem [thread:$0]  (!%p1694_p10), %s1690_s17, 128, %s1698_s24, %s221_s6  }
  0x62   : > { %p1972_p7 = scmp.ne.s32.totalorder %s1967_s30, 0 }
  0x63   : > { %s1728_s11 = sand.u32 (!%p1972_p7), 1, %s1495_s19   ;;  %p1973_p3 = scmp.ne.s32.totalorder (!%p1972_p7), %s1965_s28, 0 }
  0x64   : > { %243 = sbr.rel (%p1972_p7) target bundleno = 860 (0x35c), region = 40  ;;  %s1138_s14 = sshll.u32 (!%p1972_p7), %s1728_s11, 3 }
  0x65   : > { %s246_s16 = scalar_lea.sflag (!%p1972_p7), [#allocation4], %s1728_s11  ;;  %s249_s7 = scalar_lea.vmem (!%p1972_p7), [#allocation3], %s1138_s14 }
  0x6b   : > { %1478 = dma.done.wait (%p1973_p3), %s246_s16, 128  }
  0x6c   : > { %1480 = vsyncadd (%p1973_p3), %s246_s16, 4294967168  ;;  %p1974_p1 = scmp.ne.s32.totalorder %s1963_s26, 0 }
  0x6e   : > { %1482 = dma.done.wait (%p1974_p1), [#allocation7], 4224  }
  0x6f   : > { %1484 = vsyncadd (%p1974_p1), [#allocation7], 4294963072  ;;  %v1518_v0 = vmov 0.0   ;;  %v293_v1 = vld [vmem:[%s249_s7] sm:$0x77]  ;;  %vm473_vm0 = vcmask 1042432   ;;  %v288_v43 = vlaneseq }
  0x70   : > { %542 = vmatprep.mubr.f32.mxu0 %v1518_v0  ;;  %644 = vmatprep.mubr.f32.mxu1 %v1518_v0  ;;  %v294_v2 = vld [vmem:[#allocation6] sm:$0x77]  ;;  %v308_v4 = vcombine.high %v293_v1, %v293_v1  ;;  %vm376_vm1 = vcmask 23552   ;;  %v919_v37 = vld [vmem:[#allocation8 + $0x80] sm:$0xff]  ;;  %v920_v38 = vld [vmem:[#allocation8 + $0x88] sm:$0xff]  ;;  %s1175_s24 = sshll.u32 %s1503_s21, 4 }
  0x71   : > { %310 = vxpose.xlu0.b32.start.end [1/1] (short) %v293_v1, 128  ;;  %v375_v3 = vcombine.high %v294_v2, %v294_v2  ;;  %v1214_v39 = vpack.c.bf16 %v920_v38, %v919_v37  ;;  %v903_v40 = vld [vmem:[#allocation8] sm:$0xff]  ;;  %v904_v41 = vld [vmem:[#allocation8 + $0x8] sm:$0xff]  ;;  %v921_v44 = vld [vmem:[#allocation8 + $0x90] sm:$0xff]  ;;  %v1804_v49 = vshrl.u32 %v288_v43, 7  ;;  %vm1826_vm2 = vcmp.lt.s32.totalorder %v288_v43, 256  ;;  %s282_s25 = scalar_lea.vmem [#allocation9], %s1728_s11  ;;  %s1905_s10 = scalar_lea.hbm %s1958_s5, %s1175_s24 }
  0x72   : > { %v1216_v42 = vpack.c.bf16 %v904_v41, %v903_v40  ;;  %v922_v45 = vld [vmem:[#allocation8 + $0x98] sm:$0xff]  ;;  %v905_v47 = vld [vmem:[#allocation8 + $0x10] sm:$0xff]  ;;  %v923_v51 = vld [vmem:[#allocation8 + $0xa0] sm:$0xff]  ;;  %292 = vst.msk [vmem:[#allocation2] sm:$0x3] %vm1826_vm2, %v1518_v0  ;;  %s1032_s6 = sshll.u32 %s282_s25, 4  ;;  %s1907_s6 = int_to_ptr.vmem [resolvable:$true] %s1032_s6 }
  0x73   : > { %1141 = vmatprep.subr.msk.mxu0 %vm473_vm0, %v375_v3  ;;  %1246 = vmatprep.subr.msk.mxu1 %vm473_vm0, %v375_v3  ;;  %v1218_v46 = vpack.c.bf16 %v922_v45, %v921_v44  ;;  %v906_v48 = vld [vmem:[#allocation8 + $0x18] sm:$0xff]  ;;  %v924_v52 = vld [vmem:[#allocation8 + $0xa8] sm:$0xff]  ;;  %v299_v53 = vsub.s32 0, %v1804_v49  ;;  %v295_v55 = vld [vmem:[%s1955_s2] sm:$0x3]  ;;  %v303_v56 = vsub.s32 1, %v1804_v49 }
  0x74   : > { %1142 = vmatpush1.msk.msra.mxu0 %vm473_vm0, %v294_v2  ;;  %1247 = vmatpush1.msk.msra.mxu1 %vm473_vm0, %v294_v2  ;;  %v1220_v50 = vpack.c.bf16 %v906_v48, %v905_v47  ;;  %v1222_v54 = vpack.c.bf16 %v924_v52, %v923_v51  ;;  %v907_v57 = vld [vmem:[#allocation8 + $0x20] sm:$0xff]  ;;  %v908_v58 = vld [vmem:[#allocation8 + $0x28] sm:$0xff]  ;;  %v929_v43 = vld [vmem:[#allocation8 + $0xd0] sm:$0xff]  ;;  %s1020_s9 = scalar_lea.sflag [#allocation5], %s1728_s11  ;;  %s1425_s14 = scalar_lea.vmem %s1907_s6, 16 }
  0x75   : > { %1215 = vmatprep.subr.bf16.mxu1 %v1214_v39  ;;  %v1224_v59 = vpack.c.bf16 %v908_v58, %v907_v57  ;;  %v1813_v60 = vrot.slane %v295_v55, %v299_v53  ;;  %v1817_v62 = vrot.slane %v295_v55, %v303_v56  ;;  %v911_v37 = vld [vmem:[#allocation8 + $0x40] sm:$0xff]  ;;  %v930_v44 = vld [vmem:[#allocation8 + $0xd8] sm:$0xff]  ;;  %v932_v57 = vld [vmem:[#allocation8 + $0xe8] sm:$0xff]  ;;  %p1426_p10 = scmp.ne.s32.totalorder %s1907_s6, %s1425_s14  ;;  %s1520_s21 = smov [#allocation9]  }
  0x76   : > { %v1234_v48 = vpack.c.bf16 %v930_v44, %v929_v43  ;;  %v914_v51 = vld [vmem:[#allocation8 + $0x58] sm:$0xff]  ;;  %v931_v55 = vld [vmem:[#allocation8 + $0xe0] sm:$0xff]  ;;  %s1429_s16 = sshll.u32 %s1520_s21, 4  ;;  %s1430_s16 = int_to_ptr.vmem [resolvable:$false] %s1429_s16 }
  0x77   : > { %p1427_p4 = pnand %p1426_p10, %p1676_p8  ;;  %s1431_s7 = scalar_lea.vmem %s1430_s16, 32 }
  0x78   : > { %p1432_p6 = scmp.lt.s32.totalorder %s1907_s6, %s1430_s16  ;;  %p1433_p13 = scmp.lt.s32.totalorder %s1431_s7, %s1425_s14 }
  0x79   : > { %p1428_p2 = pneg %p1427_p4 }
  0x7a   : > { %p1434_p0 = por %p1433_p13, %p1432_p6 }
  0x7c   : > { %p1435_p5 = pnand %p1434_p0, %p1428_p2 }
  0xae   : > { %342 = vxpose.xlu0.b32.start.end [1/1] (short) %v308_v4, 128 }
  0xf1   : > { %v326_v5 = vpop.trf.xlu0 }
  0xf2   : > { %1143 = vmatmul.mubr.msk.f32.vlgmr.msra.gmra.mrb[0].mxu0 %vm376_vm1, %v326_v5 }
  0xf3   : > { %548 = vmatprep.mubr.f32.mxu0 %v1518_v0 }
  0xf5   : > { %v327_v6 = vpop.trf.xlu0 }
  0xf6   : > { %1144 = vmatmul.mubr.msk.f32.gmra.mrb[2].mxu0 %vm376_vm1, %v327_v6 }
  0xf7   : > { %554 = vmatprep.mubr.f32.mxu0 %v1518_v0 }
  0xf9   : > { %v328_v7 = vpop.trf.xlu0 }
  0xfa   : > { %1145 = vmatmul.mubr.msk.f32.gmra.mrb[4].mxu0 %vm376_vm1, %v328_v7 }
  0xfb   : > { %560 = vmatprep.mubr.f32.mxu0 %v1518_v0 }
  0xfd   : > { %v329_v8 = vpop.trf.xlu0 }
  0xfe   : > { %1146 = vmatmul.mubr.msk.f32.gmra.mrb[6].mxu0 %vm376_vm1, %v329_v8 }
  0xff   : > { %566 = vmatprep.mubr.f32.mxu0 %v1518_v0 }
 0x101   : > { %v330_v9 = vpop.trf.xlu0 }
 0x102   : > { %1147 = vmatmul.mubr.msk.f32.gmra.mrb[8].mxu0 %vm376_vm1, %v330_v9 }
 0x103   : > { %572 = vmatprep.mubr.f32.mxu0 %v1518_v0 }
 0x105   : > { %v331_v10 = vpop.trf.xlu0 }
 0x106   : > { %1148 = vmatmul.mubr.msk.f32.gmra.mrb[10].mxu0 %vm376_vm1, %v331_v10 }
 0x107   : > { %578 = vmatprep.mubr.f32.mxu0 %v1518_v0 }
 0x109   : > { %v332_v11 = vpop.trf.xlu0 }
 0x10a   : > { %1149 = vmatmul.mubr.msk.f32.gmra.mrb[12].mxu0 %vm376_vm1, %v332_v11 }
 0x10b   : > { %584 = vmatprep.mubr.f32.mxu0 %v1518_v0 }
 0x10d   : > { %v333_v12 = vpop.trf.xlu0 }
 0x10e   : > { %1150 = vmatmul.mubr.msk.f32.gmra.mrb[14].mxu0 %vm376_vm1, %v333_v12 }
 0x10f   : > { %590 = vmatprep.mubr.f32.mxu0 %v1518_v0 }
 0x111   : > { %v334_v13 = vpop.trf.xlu0 }
 0x112   : > { %1151 = vmatmul.mubr.msk.f32.gmra.mrb[16].mxu0 %vm376_vm1, %v334_v13 }
 0x113   : > { %596 = vmatprep.mubr.f32.mxu0 %v1518_v0 }
 0x115   : > { %v335_v14 = vpop.trf.xlu0 }
 0x116   : > { %1152 = vmatmul.mubr.msk.f32.gmra.mrb[18].mxu0 %vm376_vm1, %v335_v14 }
 0x117   : > { %602 = vmatprep.mubr.f32.mxu0 %v1518_v0 }
 0x119   : > { %v336_v15 = vpop.trf.xlu0 }
 0x11a   : > { %1153 = vmatmul.mubr.msk.f32.gmra.mrb[20].mxu0 %vm376_vm1, %v336_v15 }
 0x11b   : > { %608 = vmatprep.mubr.f32.mxu0 %v1518_v0 }
 0x11d   : > { %v337_v16 = vpop.trf.xlu0 }
 0x11e   : > { %1154 = vmatmul.mubr.msk.f32.gmra.mrb[22].mxu0 %vm376_vm1, %v337_v16 }
 0x11f   : > { %614 = vmatprep.mubr.f32.mxu0 %v1518_v0 }
 0x121   : > { %v338_v17 = vpop.trf.xlu0 }
 0x122   : > { %1155 = vmatmul.mubr.msk.f32.gmra.mrb[24].mxu0 %vm376_vm1, %v338_v17 }
 0x123   : > { %620 = vmatprep.mubr.f32.mxu0 %v1518_v0 }
 0x125   : > { %v339_v18 = vpop.trf.xlu0 }
 0x126   : > { %1156 = vmatmul.mubr.msk.f32.gmra.mrb[26].mxu0 %vm376_vm1, %v339_v18 }
 0x127   : > { %626 = vmatprep.mubr.f32.mxu0 %v1518_v0 }
 0x129   : > { %v340_v19 = vpop.trf.xlu0 }
 0x12a   : > { %1157 = vmatmul.mubr.msk.f32.gmra.mrb[28].mxu0 %vm376_vm1, %v340_v19 }
 0x12b   : > { %632 = vmatprep.mubr.f32.mxu0 %v1518_v0 }
 0x12d   : > { %v341_v20 = vpop.trf.xlu0 }
 0x12e   : > { %1158 = vmatmul.mubr.msk.f32.gmra.mrb[30].mxu0 %vm376_vm1, %v341_v20 }
 0x12f   : > { %638 = vmatprep.mubr.f32.mxu0 %v1518_v0 }
 0x131   : > { %v358_v21 = vpop.trf.xlu0 }
 0x132   : > { %1159 = vmatmul.mubr.msk.f32.gmra.mrb[32].mxu0 %vm376_vm1, %v358_v21 }
 0x135   : > { %v359_v22 = vpop.trf.xlu0 }
 0x136   : > { %1160 = vmatmul.mubr.msk.f32.vlgmr.msra.gmra.mrb[0].mxu1 %vm376_vm1, %v359_v22 }
 0x137   : > { %650 = vmatprep.mubr.f32.mxu1 %v1518_v0  ;;  %1217 = vmatpush3.bf16.msra.mxu1 %v1216_v42  ;;  %v912_v42 = vld [vmem:[#allocation8 + $0x48] sm:$0xff] }
 0x138   : > { %1219 = vmatprep.subr.bf16.mxu1 %v1218_v46  ;;  %v1232_v46 = vpack.c.bf16 %v912_v42, %v911_v37 }
 0x139   : > { %v360_v23 = vpop.trf.xlu0 }
 0x13a   : > { %1161 = vmatmul.mubr.msk.f32.gmra.mrb[2].mxu1 %vm376_vm1, %v360_v23 }
 0x13b   : > { %656 = vmatprep.mubr.f32.mxu1 %v1518_v0  ;;  %1221 = vmatpush3.bf16.msra.mxu1 %v1220_v50  ;;  %v913_v50 = vld [vmem:[#allocation8 + $0x50] sm:$0xff] }
 0x13c   : > { %1223 = vmatprep.subr.bf16.mxu1 %v1222_v54 }
 0x13d   : > { %v361_v24 = vpop.trf.xlu0 }
 0x13e   : > { %1162 = vmatmul.mubr.msk.f32.gmra.mrb[4].mxu1 %vm376_vm1, %v361_v24 }
 0x13f   : > { %662 = vmatprep.mubr.f32.mxu1 %v1518_v0  ;;  %1225 = vmatpush3.bf16.msra.mxu1 %v1224_v59 }
 0x141   : > { %v362_v25 = vpop.trf.xlu0 }
 0x142   : > { %1163 = vmatmul.mubr.msk.f32.gmra.mrb[6].mxu1 %vm376_vm1, %v362_v25 }
 0x143   : > { %668 = vmatprep.mubr.f32.mxu1 %v1518_v0 }
 0x145   : > { %v363_v26 = vpop.trf.xlu0 }
 0x146   : > { %1164 = vmatmul.mubr.msk.f32.gmra.mrb[8].mxu1 %vm376_vm1, %v363_v26  ;;  %v925_v26 = vld [vmem:[#allocation8 + $0xb0] sm:$0xff] }
 0x147   : > { %674 = vmatprep.mubr.f32.mxu1 %v1518_v0 }
 0x149   : > { %v364_v27 = vpop.trf.xlu0 }
 0x14a   : > { %1165 = vmatmul.mubr.msk.f32.gmra.mrb[10].mxu1 %vm376_vm1, %v364_v27  ;;  %v926_v27 = vld [vmem:[#allocation8 + $0xb8] sm:$0xff] }
 0x14b   : > { %680 = vmatprep.mubr.f32.mxu1 %v1518_v0 }
 0x14d   : > { %v365_v28 = vpop.trf.xlu0 }
 0x14e   : > { %1166 = vmatmul.mubr.msk.f32.gmra.mrb[12].mxu1 %vm376_vm1, %v365_v28 }
 0x14f   : > { %686 = vmatprep.mubr.f32.mxu1 %v1518_v0 }
 0x151   : > { %v366_v29 = vpop.trf.xlu0 }
 0x152   : > { %1167 = vmatmul.mubr.msk.f32.gmra.mrb[14].mxu1 %vm376_vm1, %v366_v29  ;;  %v1226_v29 = vpack.c.bf16 %v926_v27, %v925_v26 }
 0x153   : > { %692 = vmatprep.mubr.f32.mxu1 %v1518_v0 }
 0x154   : > { %1227 = vmatprep.subr.bf16.mxu1 %v1226_v29 }
 0x155   : > { %v367_v30 = vpop.trf.xlu0 }
 0x156   : > { %1168 = vmatmul.mubr.msk.f32.gmra.mrb[16].mxu1 %vm376_vm1, %v367_v30  ;;  %v909_v30 = vld [vmem:[#allocation8 + $0x30] sm:$0xff] }
 0x157   : > { %698 = vmatprep.mubr.f32.mxu1 %v1518_v0 }
 0x159   : > { %v368_v31 = vpop.trf.xlu0 }
 0x15a   : > { %1169 = vmatmul.mubr.msk.f32.gmra.mrb[18].mxu1 %vm376_vm1, %v368_v31  ;;  %v910_v31 = vld [vmem:[#allocation8 + $0x38] sm:$0xff] }
 0x15b   : > { %704 = vmatprep.mubr.f32.mxu1 %v1518_v0 }
 0x15d   : > { %v369_v32 = vpop.trf.xlu0 }
 0x15e   : > { %1170 = vmatmul.mubr.msk.f32.gmra.mrb[20].mxu1 %vm376_vm1, %v369_v32 }
 0x15f   : > { %710 = vmatprep.mubr.f32.mxu1 %v1518_v0 }
 0x161   : > { %v370_v33 = vpop.trf.xlu0 }
 0x162   : > { %1171 = vmatmul.mubr.msk.f32.gmra.mrb[22].mxu1 %vm376_vm1, %v370_v33 }
 0x163   : > { %716 = vmatprep.mubr.f32.mxu1 %v1518_v0 }
 0x165   : > { %v371_v34 = vpop.trf.xlu0 }
 0x166   : > { %1172 = vmatmul.mubr.msk.f32.gmra.mrb[24].mxu1 %vm376_vm1, %v371_v34  ;;  %v1228_v34 = vpack.c.bf16 %v910_v31, %v909_v30 }
 0x167   : > { %722 = vmatprep.mubr.f32.mxu1 %v1518_v0 }
 0x168   : > { %1229 = vmatpush3.bf16.msra.mxu1 %v1228_v34 }
 0x169   : > { %v372_v35 = vpop.trf.xlu0 }
 0x16a   : > { %1173 = vmatmul.mubr.msk.f32.gmra.mrb[26].mxu1 %vm376_vm1, %v372_v35  ;;  %v927_v35 = vld [vmem:[#allocation8 + $0xc0] sm:$0xff] }
 0x16b   : > { %728 = vmatprep.mubr.f32.mxu1 %v1518_v0 }
 0x16d   : > { %v373_v36 = vpop.trf.xlu0 }
 0x16e   : > { %1174 = vmatmul.mubr.msk.f32.gmra.mrb[28].mxu1 %vm376_vm1, %v373_v36  ;;  %v928_v36 = vld [vmem:[#allocation8 + $0xc8] sm:$0xff] }
 0x16f   : > { %v1230_v41 = vpack.c.bf16 %v928_v36, %v927_v35 }
 0x171   : > { %1231 = vmatprep.subr.bf16.mxu1 %v1230_v41 }
 0x172   : > { %1233 = vmatpush3.bf16.msra.mxu1 %v1232_v46 }
 0x173   : > { %1235 = vmatprep.subr.bf16.mxu1 %v1234_v48 }
 0x1c5   : > { %v544_v61 = vpop.f32.mrb[0].mxu0 }
 0x1c6   : > { %v546_v63 = vpop.f32.mrb[1].mxu0  ;;  %v545_v1 = vadd.f32 %v544_v61, %v1813_v60 }
 0x1c7   : > { %v547_v2 = vadd.f32 %v546_v63, %v1817_v62 }
 0x1c8   : > { %v735_v7 = vmax.f32 %v545_v1, 0.0 }
 0x1c9   : > { %v550_v3 = vpop.f32.mrb[2].mxu0  ;;  %v736_v9 = vmax.f32 %v547_v2, 0.0  ;;  %v1236_v2 = vpack.c.bf16 %v914_v51, %v913_v50 }
 0x1ca   : > { %v551_v4 = vadd.f32 %v550_v3, %v1813_v60  ;;  %v552_v5 = vpop.f32.mrb[3].mxu0 }
 0x1cb   : > { %v553_v6 = vadd.f32 %v552_v5, %v1817_v62  ;;  %v915_v5 = vld [vmem:[#allocation8 + $0x60] sm:$0xff]  ;;  %1237 = vmatpush3.bf16.msra.mxu1 %v1236_v2 }
 0x1cc   : > { %v737_v8 = vmax.f32 %v551_v4, 0.0  ;;  %v1238_v4 = vpack.c.bf16 %v932_v57, %v931_v55 }
 0x1cd   : > { %v738_v10 = vmax.f32 %v553_v6, 0.0  ;;  %v556_v11 = vpop.f32.mrb[4].mxu0  ;;  %v916_v6 = vld [vmem:[#allocation8 + $0x68] sm:$0xff] }
 0x1ce   : > { %v800_v12 = vadd.f32 %v737_v8, %v735_v7  ;;  %v557_v13 = vadd.f32 %v556_v11, %v1813_v60  ;;  %v558_v14 = vpop.f32.mrb[5].mxu0  ;;  %1239 = vmatprep.subr.bf16.mxu1 %v1238_v4 }
 0x1cf   : > { %v837_v15 = vadd.f32 %v738_v10, %v736_v9  ;;  %v559_v16 = vadd.f32 %v558_v14, %v1817_v62  ;;  %v933_v9 = vld [vmem:[#allocation8 + $0xf0] sm:$0xff]  ;;  %v934_v10 = vld [vmem:[#allocation8 + $0xf8] sm:$0xff] }
 0x1d0   : > { %v739_v17 = vmax.f32 %v557_v13, 0.0 }
 0x1d1   : > { %v740_v18 = vmax.f32 %v559_v16, 0.0  ;;  %v562_v19 = vpop.f32.mrb[6].mxu0  ;;  %v1240_v16 = vpack.c.bf16 %v916_v6, %v915_v5 }
 0x1d2   : > { %v801_v20 = vadd.f32 %v800_v12, %v739_v17  ;;  %v563_v21 = vadd.f32 %v562_v19, %v1813_v60  ;;  %v564_v22 = vpop.f32.mrb[7].mxu0  ;;  %v917_v19 = vld [vmem:[#allocation8 + $0x70] sm:$0xff] }
 0x1d3   : > { %v838_v24 = vadd.f32 %v837_v15, %v740_v18  ;;  %v565_v25 = vadd.f32 %v564_v22, %v1817_v62  ;;  %v1242_v18 = vpack.c.bf16 %v934_v10, %v933_v9  ;;  %1241 = vmatpush3.bf16.msra.mxu1 %v1240_v16 }
 0x1d4   : > { %v741_v28 = vmax.f32 %v563_v21, 0.0 }
 0x1d5   : > { %v742_v32 = vmax.f32 %v565_v25, 0.0  ;;  %v568_v33 = vpop.f32.mrb[8].mxu0  ;;  %1243 = vmatprep.subr.bf16.mxu1 %v1242_v18 }
 0x1d6   : > { %v802_v38 = vadd.f32 %v801_v20, %v741_v28  ;;  %v569_v39 = vadd.f32 %v568_v33, %v1813_v60  ;;  %v570_v40 = vpop.f32.mrb[9].mxu0  ;;  %v918_v20 = vld [vmem:[#allocation8 + $0x78] sm:$0xff] }
 0x1d7   : > { %v839_v0 = vadd.f32 %v838_v24, %v742_v32  ;;  %v571_v45 = vadd.f32 %v570_v40, %v1817_v62  ;;  %v1244_v29 = vpack.c.bf16 %v918_v20, %v917_v19 }
 0x1d8   : > { %v743_v47 = vmax.f32 %v569_v39, 0.0 }
 0x1d9   : > { %v744_v52 = vmax.f32 %v571_v45, 0.0  ;;  %v574_v54 = vpop.f32.mrb[10].mxu0  ;;  %1245 = vmatpush3.bf16.msra.mxu1 %v1244_v29 }
 0x1da   : > { %v803_v58 = vadd.f32 %v802_v38, %v743_v47  ;;  %v575_v59 = vadd.f32 %v574_v54, %v1813_v60  ;;  %v576_v61 = vpop.f32.mrb[11].mxu0 }
 0x1db   : > { %v840_v63 = vadd.f32 %v839_v0, %v744_v52  ;;  %v577_v1 = vadd.f32 %v576_v61, %v1817_v62 }
 0x1dc   : > { %v745_v3 = vmax.f32 %v575_v59, 0.0 }
 0x1dd   : > { %v746_v7 = vmax.f32 %v577_v1, 0.0  ;;  %v580_v8 = vpop.f32.mrb[12].mxu0 }
 0x1de   : > { %v804_v11 = vadd.f32 %v803_v58, %v745_v3  ;;  %v581_v12 = vadd.f32 %v580_v8, %v1813_v60  ;;  %v582_v13 = vpop.f32.mrb[13].mxu0 }
 0x1df   : > { %v841_v14 = vadd.f32 %v840_v63, %v746_v7  ;;  %v583_v15 = vadd.f32 %v582_v13, %v1817_v62 }
 0x1e0   : > { %v747_v17 = vmax.f32 %v581_v12, 0.0 }
 0x1e1   : > { %v748_v21 = vmax.f32 %v583_v15, 0.0  ;;  %v586_v22 = vpop.f32.mrb[14].mxu0 }
 0x1e2   : > { %v805_v24 = vadd.f32 %v804_v11, %v747_v17  ;;  %v587_v25 = vadd.f32 %v586_v22, %v1813_v60  ;;  %v588_v26 = vpop.f32.mrb[15].mxu0 }
 0x1e3   : > { %v842_v27 = vadd.f32 %v841_v14, %v748_v21  ;;  %v589_v28 = vadd.f32 %v588_v26, %v1817_v62 }
 0x1e4   : > { %v749_v30 = vmax.f32 %v587_v25, 0.0 }
 0x1e5   : > { %v750_v31 = vmax.f32 %v589_v28, 0.0  ;;  %v592_v32 = vpop.f32.mrb[16].mxu0 }
 0x1e6   : > { %v806_v33 = vadd.f32 %v805_v24, %v749_v30  ;;  %v593_v34 = vadd.f32 %v592_v32, %v1813_v60  ;;  %v594_v35 = vpop.f32.mrb[17].mxu0 }
 0x1e7   : > { %v843_v36 = vadd.f32 %v842_v27, %v750_v31  ;;  %v595_v37 = vadd.f32 %v594_v35, %v1817_v62 }
 0x1e8   : > { %v751_v38 = vmax.f32 %v593_v34, 0.0 }
 0x1e9   : > { %v752_v39 = vmax.f32 %v595_v37, 0.0  ;;  %v598_v40 = vpop.f32.mrb[18].mxu0 }
 0x1ea   : > { %v807_v41 = vadd.f32 %v806_v33, %v751_v38  ;;  %v599_v42 = vadd.f32 %v598_v40, %v1813_v60  ;;  %v600_v43 = vpop.f32.mrb[19].mxu0 }
 0x1eb   : > { %v844_v44 = vadd.f32 %v843_v36, %v752_v39  ;;  %v601_v0 = vadd.f32 %v600_v43, %v1817_v62 }
 0x1ec   : > { %v753_v45 = vmax.f32 %v599_v42, 0.0 }
 0x1ed   : > { %v754_v46 = vmax.f32 %v601_v0, 0.0  ;;  %v604_v47 = vpop.f32.mrb[20].mxu0 }
 0x1ee   : > { %v808_v48 = vadd.f32 %v807_v41, %v753_v45  ;;  %v605_v50 = vadd.f32 %v604_v47, %v1813_v60  ;;  %v606_v51 = vpop.f32.mrb[21].mxu0 }
 0x1ef   : > { %v845_v52 = vadd.f32 %v844_v44, %v754_v46  ;;  %v607_v54 = vadd.f32 %v606_v51, %v1817_v62 }
 0x1f0   : > { %v755_v55 = vmax.f32 %v605_v50, 0.0 }
 0x1f1   : > { %v756_v57 = vmax.f32 %v607_v54, 0.0  ;;  %v610_v58 = vpop.f32.mrb[22].mxu0 }
 0x1f2   : > { %v809_v59 = vadd.f32 %v808_v48, %v755_v55  ;;  %v611_v61 = vadd.f32 %v610_v58, %v1813_v60  ;;  %v612_v63 = vpop.f32.mrb[23].mxu0 }
 0x1f3   : > { %v846_v1 = vadd.f32 %v845_v52, %v756_v57  ;;  %v613_v2 = vadd.f32 %v612_v63, %v1817_v62 }
 0x1f4   : > { %v757_v3 = vmax.f32 %v611_v61, 0.0 }
 0x1f5   : > { %v758_v4 = vmax.f32 %v613_v2, 0.0  ;;  %v616_v5 = vpop.f32.mrb[24].mxu0 }
 0x1f6   : > { %v810_v6 = vadd.f32 %v809_v59, %v757_v3  ;;  %v617_v7 = vadd.f32 %v616_v5, %v1813_v60  ;;  %v618_v8 = vpop.f32.mrb[25].mxu0 }
 0x1f7   : > { %v847_v9 = vadd.f32 %v846_v1, %v758_v4  ;;  %v619_v10 = vadd.f32 %v618_v8, %v1817_v62 }
 0x1f8   : > { %v759_v11 = vmax.f32 %v617_v7, 0.0 }
 0x1f9   : > { %v760_v12 = vmax.f32 %v619_v10, 0.0  ;;  %v622_v13 = vpop.f32.mrb[26].mxu0 }
 0x1fa   : > { %v811_v14 = vadd.f32 %v810_v6, %v759_v11  ;;  %v623_v15 = vadd.f32 %v622_v13, %v1813_v60  ;;  %v624_v16 = vpop.f32.mrb[27].mxu0 }
 0x1fb   : > { %v848_v17 = vadd.f32 %v847_v9, %v760_v12  ;;  %v625_v18 = vadd.f32 %v624_v16, %v1817_v62 }
 0x1fc   : > { %v761_v19 = vmax.f32 %v623_v15, 0.0 }
 0x1fd   : > { %v762_v20 = vmax.f32 %v625_v18, 0.0  ;;  %v628_v21 = vpop.f32.mrb[28].mxu0 }
 0x1fe   : > { %v812_v22 = vadd.f32 %v811_v14, %v761_v19  ;;  %v629_v24 = vadd.f32 %v628_v21, %v1813_v60  ;;  %v630_v25 = vpop.f32.mrb[29].mxu0 }
 0x1ff   : > { %v849_v26 = vadd.f32 %v848_v17, %v762_v20  ;;  %v631_v27 = vadd.f32 %v630_v25, %v1817_v62 }
 0x200   : > { %v763_v28 = vmax.f32 %v629_v24, 0.0 }
 0x201   : > { %v764_v29 = vmax.f32 %v631_v27, 0.0  ;;  %v634_v30 = vpop.f32.mrb[30].mxu0 }
 0x202   : > { %v813_v31 = vadd.f32 %v812_v22, %v763_v28  ;;  %v635_v32 = vadd.f32 %v634_v30, %v1813_v60  ;;  %v636_v33 = vpop.f32.mrb[31].mxu0 }
 0x203   : > { %v850_v34 = vadd.f32 %v849_v26, %v764_v29  ;;  %v637_v35 = vadd.f32 %v636_v33, %v1817_v62 }
 0x204   : > { %v765_v36 = vmax.f32 %v635_v32, 0.0 }
 0x205   : > { %v766_v37 = vmax.f32 %v637_v35, 0.0  ;;  %v640_v38 = vpop.f32.mrb[32].mxu0 }
 0x206   : > { %v814_v39 = vadd.f32 %v813_v31, %v765_v36  ;;  %v641_v40 = vadd.f32 %v640_v38, %v1813_v60  ;;  %v642_v41 = vpop.f32.mrb[33].mxu0 }
 0x207   : > { %v851_v42 = vadd.f32 %v850_v34, %v766_v37  ;;  %v643_v43 = vadd.f32 %v642_v41, %v1817_v62 }
 0x208   : > { %v767_v44 = vmax.f32 %v641_v40, 0.0 }
 0x209   : > { %v768_v0 = vmax.f32 %v643_v43, 0.0  ;;  %v646_v45 = vpop.f32.mrb[0].mxu1 }
 0x20a   : > { %v815_v46 = vadd.f32 %v814_v39, %v767_v44  ;;  %v647_v47 = vadd.f32 %v646_v45, %v1813_v60  ;;  %v648_v48 = vpop.f32.mrb[1].mxu1 }
 0x20b   : > { %v852_v50 = vadd.f32 %v851_v42, %v768_v0  ;;  %v649_v51 = vadd.f32 %v648_v48, %v1817_v62 }
 0x20c   : > { %v769_v52 = vmax.f32 %v647_v47, 0.0 }
 0x20d   : > { %v770_v54 = vmax.f32 %v649_v51, 0.0  ;;  %v652_v55 = vpop.f32.mrb[2].mxu1 }
 0x20e   : > { %v816_v57 = vadd.f32 %v815_v46, %v769_v52  ;;  %v653_v58 = vadd.f32 %v652_v55, %v1813_v60  ;;  %v654_v59 = vpop.f32.mrb[3].mxu1 }
 0x20f   : > { %v853_v61 = vadd.f32 %v852_v50, %v770_v54  ;;  %v655_v63 = vadd.f32 %v654_v59, %v1817_v62 }
 0x210   : > { %v771_v1 = vmax.f32 %v653_v58, 0.0 }
 0x211   : > { %v772_v2 = vmax.f32 %v655_v63, 0.0  ;;  %v658_v3 = vpop.f32.mrb[4].mxu1 }
 0x212   : > { %v817_v4 = vadd.f32 %v816_v57, %v771_v1  ;;  %v659_v5 = vadd.f32 %v658_v3, %v1813_v60  ;;  %v660_v6 = vpop.f32.mrb[5].mxu1 }
 0x213   : > { %v854_v7 = vadd.f32 %v853_v61, %v772_v2  ;;  %v661_v8 = vadd.f32 %v660_v6, %v1817_v62 }
 0x214   : > { %v773_v9 = vmax.f32 %v659_v5, 0.0 }
 0x215   : > { %v774_v10 = vmax.f32 %v661_v8, 0.0  ;;  %v664_v11 = vpop.f32.mrb[6].mxu1 }
 0x216   : > { %v818_v12 = vadd.f32 %v817_v4, %v773_v9  ;;  %v665_v13 = vadd.f32 %v664_v11, %v1813_v60  ;;  %v666_v14 = vpop.f32.mrb[7].mxu1 }
 0x217   : > { %v855_v15 = vadd.f32 %v854_v7, %v774_v10  ;;  %v667_v16 = vadd.f32 %v666_v14, %v1817_v62 }
 0x218   : > { %v775_v17 = vmax.f32 %v665_v13, 0.0 }
 0x219   : > { %v776_v18 = vmax.f32 %v667_v16, 0.0  ;;  %v670_v19 = vpop.f32.mrb[8].mxu1 }
 0x21a   : > { %v819_v20 = vadd.f32 %v818_v12, %v775_v17  ;;  %v671_v21 = vadd.f32 %v670_v19, %v1813_v60  ;;  %v672_v22 = vpop.f32.mrb[9].mxu1 }
 0x21b   : > { %v856_v24 = vadd.f32 %v855_v15, %v776_v18  ;;  %v673_v25 = vadd.f32 %v672_v22, %v1817_v62 }
 0x21c   : > { %v777_v26 = vmax.f32 %v671_v21, 0.0 }
 0x21d   : > { %v778_v27 = vmax.f32 %v673_v25, 0.0  ;;  %v676_v28 = vpop.f32.mrb[10].mxu1 }
 0x21e   : > { %v820_v29 = vadd.f32 %v819_v20, %v777_v26  ;;  %v677_v30 = vadd.f32 %v676_v28, %v1813_v60  ;;  %v678_v31 = vpop.f32.mrb[11].mxu1 }
 0x21f   : > { %v857_v32 = vadd.f32 %v856_v24, %v778_v27  ;;  %v679_v33 = vadd.f32 %v678_v31, %v1817_v62 }
 0x220   : > { %v779_v34 = vmax.f32 %v677_v30, 0.0 }
 0x221   : > { %v780_v35 = vmax.f32 %v679_v33, 0.0  ;;  %v682_v36 = vpop.f32.mrb[12].mxu1 }
 0x222   : > { %v821_v37 = vadd.f32 %v820_v29, %v779_v34  ;;  %v683_v38 = vadd.f32 %v682_v36, %v1813_v60  ;;  %v684_v39 = vpop.f32.mrb[13].mxu1 }
 0x223   : > { %v858_v40 = vadd.f32 %v857_v32, %v780_v35  ;;  %v685_v41 = vadd.f32 %v684_v39, %v1817_v62 }
 0x224   : > { %v781_v42 = vmax.f32 %v683_v38, 0.0 }
 0x225   : > { %v782_v43 = vmax.f32 %v685_v41, 0.0  ;;  %v688_v44 = vpop.f32.mrb[14].mxu1 }
 0x226   : > { %v822_v0 = vadd.f32 %v821_v37, %v781_v42  ;;  %v689_v45 = vadd.f32 %v688_v44, %v1813_v60  ;;  %v690_v46 = vpop.f32.mrb[15].mxu1 }
 0x227   : > { %v859_v47 = vadd.f32 %v858_v40, %v782_v43  ;;  %v691_v48 = vadd.f32 %v690_v46, %v1817_v62 }
 0x228   : > { %v783_v50 = vmax.f32 %v689_v45, 0.0 }
 0x229   : > { %v784_v51 = vmax.f32 %v691_v48, 0.0  ;;  %v694_v52 = vpop.f32.mrb[16].mxu1 }
 0x22a   : > { %v823_v54 = vadd.f32 %v822_v0, %v783_v50  ;;  %v695_v55 = vadd.f32 %v694_v52, %v1813_v60  ;;  %v696_v57 = vpop.f32.mrb[17].mxu1 }
 0x22b   : > { %v860_v58 = vadd.f32 %v859_v47, %v784_v51  ;;  %v697_v59 = vadd.f32 %v696_v57, %v1817_v62 }
 0x22c   : > { %v785_v61 = vmax.f32 %v695_v55, 0.0 }
 0x22d   : > { %v786_v63 = vmax.f32 %v697_v59, 0.0  ;;  %v700_v1 = vpop.f32.mrb[18].mxu1 }
 0x22e   : > { %v824_v2 = vadd.f32 %v823_v54, %v785_v61  ;;  %v701_v3 = vadd.f32 %v700_v1, %v1813_v60  ;;  %v702_v4 = vpop.f32.mrb[19].mxu1 }
 0x22f   : > { %v861_v5 = vadd.f32 %v860_v58, %v786_v63  ;;  %v703_v6 = vadd.f32 %v702_v4, %v1817_v62  ;;  %v1519_v58 = vmov 1966171168  }
 0x230   : > { %v787_v7 = vmax.f32 %v701_v3, 0.0  ;;  %v878_v59 = vunpack.c.l.s4 %v1519_v58 }
 0x231   : > { %v788_v8 = vmax.f32 %v703_v6, 0.0  ;;  %v706_v9 = vpop.f32.mrb[20].mxu1 }
 0x232   : > { %v825_v10 = vadd.f32 %v824_v2, %v787_v7  ;;  %v707_v11 = vadd.f32 %v706_v9, %v1813_v60  ;;  %v708_v12 = vpop.f32.mrb[21].mxu1  ;;  %v879_v3 = vunpack.c.0.s8 %v878_v59  ;;  %v799_v9 = vld [vmem:[#allocation2] sm:$0x3] }
 0x233   : > { %v862_v13 = vadd.f32 %v861_v5, %v788_v8  ;;  %v709_v14 = vadd.f32 %v708_v12, %v1817_v62 }
 0x234   : > { %v789_v15 = vmax.f32 %v707_v11, 0.0 }
 0x235   : > { %v790_v16 = vmax.f32 %v709_v14, 0.0  ;;  %v712_v17 = vpop.f32.mrb[22].mxu1 }
 0x236   : > { %v826_v18 = vadd.f32 %v825_v10, %v789_v15  ;;  %v713_v19 = vadd.f32 %v712_v17, %v1813_v60  ;;  %v714_v20 = vpop.f32.mrb[23].mxu1  ;;  %v935_v17 = vld [vmem:[%s1957_s4] sm:$0x1] }
 0x237   : > { %v863_v21 = vadd.f32 %v862_v13, %v790_v16  ;;  %v715_v22 = vadd.f32 %v714_v20, %v1817_v62 }
 0x238   : > { %v791_v24 = vmax.f32 %v713_v19, 0.0 }
 0x239   : > { %v792_v25 = vmax.f32 %v715_v22, 0.0  ;;  %v718_v26 = vpop.f32.mrb[24].mxu1 }
 0x23a   : > { %v827_v27 = vadd.f32 %v826_v18, %v791_v24  ;;  %v719_v28 = vadd.f32 %v718_v26, %v1813_v60  ;;  %v720_v29 = vpop.f32.mrb[25].mxu1 }
 0x23b   : > { %v864_v30 = vadd.f32 %v863_v21, %v792_v25  ;;  %v721_v31 = vadd.f32 %v720_v29, %v1817_v62 }
 0x23c   : > { %v793_v32 = vmax.f32 %v719_v28, 0.0 }
 0x23d   : > { %v794_v33 = vmax.f32 %v721_v31, 0.0  ;;  %v724_v34 = vpop.f32.mrb[26].mxu1 }
 0x23e   : > { %v828_v35 = vadd.f32 %v827_v27, %v793_v32  ;;  %v725_v36 = vadd.f32 %v724_v34, %v1813_v60  ;;  %v726_v37 = vpop.f32.mrb[27].mxu1 }
 0x23f   : > { %v865_v38 = vadd.f32 %v864_v30, %v794_v33  ;;  %v727_v39 = vadd.f32 %v726_v37, %v1817_v62 }
 0x240   : > { %v795_v40 = vmax.f32 %v725_v36, 0.0 }
 0x241   : > { %v796_v41 = vmax.f32 %v727_v39, 0.0  ;;  %v730_v42 = vpop.f32.mrb[28].mxu1 }
 0x242   : > { %v829_v43 = vadd.f32 %v828_v35, %v795_v40  ;;  %v731_v44 = vadd.f32 %v730_v42, %v1813_v60  ;;  %v732_v0 = vpop.f32.mrb[29].mxu1 }
 0x243   : > { %v866_v45 = vadd.f32 %v865_v38, %v796_v41  ;;  %v733_v46 = vadd.f32 %v732_v0, %v1817_v62  ;;  %v882_v62 = vsub.s32 %v879_v3, %v1804_v49 }
 0x244   : > { %v797_v47 = vmax.f32 %v731_v44, 0.0 }
 0x245   : > { %v798_v48 = vmax.f32 %v733_v46, 0.0 }
 0x246   : > { %v830_v50 = vadd.f32 %v829_v43, %v797_v47 }
 0x247   : > { %v867_v51 = vadd.f32 %v866_v45, %v798_v48 }
 0x248   : > { %v831_v52 = vrot.slane %v830_v50, 4 }
 0x249   : > { %v868_v54 = vrot.slane %v867_v51, 4 }
 0x24a   : > { %v832_v55 = vadd.f32 %v831_v52, %v830_v50 }
 0x24b   : > { %v869_v57 = vadd.f32 %v868_v54, %v867_v51 }
 0x24c   : > { %v833_v61 = vrot.slane %v832_v55, 2 }
 0x24d   : > { %v870_v63 = vrot.slane %v869_v57, 2 }
 0x24e   : > { %v834_v1 = vadd.f32 %v833_v61, %v832_v55 }
 0x24f   : > { %v871_v2 = vadd.f32 %v870_v63, %v869_v57 }
 0x250   : > { %v835_v60 = vrot.slane %v834_v1, 1 }
 0x251   : > { %v872_v4 = vrot.slane %v871_v2, 1 }
 0x252   : > { %v836_v5 = vadd.f32 %v835_v60, %v834_v1 }
 0x253   : > { %v873_v6 = vadd.f32 %v872_v4, %v871_v2 }
 0x255   : > { %v876_v7 = vcombine.low %v836_v5, %v873_v6 }
 0x257   : > { %v883_v8 = vrot.slane %v876_v7, %v882_v62 }
 0x259   : > { %v890_v10 = vrot.slane %v883_v8, %v882_v62 }
 0x25b   : > { %v892_v11 = vadd.f32 %v890_v10, %v799_v9 }
 0x25d   : > { %897 = vst.msk [vmem:[#allocation2] sm:$0x3] %vm1826_vm2, %v892_v11 }
 0x264   : > { %v901_v12 = vld [vmem:[#allocation2] sm:$0x3] }
 0x265   : > { %v902_v13 = vmul.f32 0.00390625, %v901_v12 }
 0x267   : > { %v940_v14 = vrot.slane %v902_v13, %v299_v53  ;;  %v944_v15 = vrot.slane %v902_v13, %v303_v56 }
 0x269   : > { %1011 = vmatprep.mubr.f32.mxu1 %v944_v15 }
 0x26a   : > { %1012 = vmatmul.mubr.f32.vlgmr.msra.gmra.mrb[30].mxu1 %v940_v14 }
 0x33d   : > { %v1211_v16 = vpop.f32.mrb[30].mxu1 }
 0x33e   : > { %v1212_v18 = vpop.f32.mrb[31].mxu1 }
 0x33f   : > { %v1213_v23 = vadd.f32 %v1212_v18, %v1211_v16 }
 0x341   : > { %v1014_v19 = vadd.f32 %v1213_v23, %v935_v17 }
 0x343   : > { %1337 = vtanh.f32 %v1014_v19 }
 0x34d   : > { %v1338_v49 = vpop.eup %1337 }
 0x34e   : > { %1018 = vst [vmem:[%s282_s25] sm:$0x1] %v1338_v49 }
 0x34f   : > { %1438 = shalt.err (!%p1435_p5)
}
 0x350   : > { %s1439_s11 = scalar_lea.hbm %s1905_s10, 16  ;;  %s1443_s30 = scalar_lea.hbm %s1958_s5, 160 }
 0x351   : > { %p1440_p9 = scmp.ne.s32.totalorder %s1905_s10, %s1439_s11  ;;  %p1444_p7 = scmp.lt.u32.totalorder %s1905_s10, %s1958_s5 }
 0x352   : > { %p1445_p3 = scmp.lt.u32.totalorder %s1443_s30, %s1439_s11  ;;  %p1447_p10 = scmp.lt.u32.totalorder %s1439_s11, %s1905_s10 }
 0x353   : > { %p1441_p12 = pnand %p1440_p9, %p1676_p8 }
 0x354   : > { %p1446_p1 = por %p1445_p3, %p1444_p7 }
 0x355   : > { %p1442_p11 = pneg %p1441_p12 }
 0x356   : > { %p1448_p4 = por %p1447_p10, %p1446_p1 }
 0x358   : > { %p1449_p2 = pnand %p1448_p4, %p1442_p11 }
 0x35a   : > { %1452 = shalt.err (!%p1449_p2)
}
 0x35b   : > { %1258 = dma.vmem_to_hbm [thread:$0]  (%p1676_p8), %s1907_s6, 16, %s1905_s10, %s1020_s9  }
 0x35c PF: > { %p1280_p6 = scmp.ge.s32.totalorder %s1511_s23, 2  ;;  %s1044_s25 = sand.u32 1, %s1491_s18  }
 0x35d   : > { %p1977_p13 = scmp.ne.s32.totalorder %s1966_s29, 0  ;;  %s1045_s13 = scalar_lea.sflag [#allocation5], %s1044_s25 }
 0x35f   : > { %p1272_p0 = pnand %p1280_p6, %p1977_p13 }
 0x361   : > { %1486 = dma.done.wait (!%p1272_p0), %s1045_s13, 16  }
 0x362   : > { %1488 = vsyncadd (!%p1272_p0), %s1045_s13, 4294967280  ;;  %s22_s23 = sadd.s32 1, %s1511_s23   ;;  %s1978_s18 = smov %s1495_s19 }
 0x363   : > { %p19_p5 = scmp.ge.s32.totalorder %s22_s23, 12   ;;  %s1979_s19 = smov %s1499_s20 }
 0x364   : > { %s1980_s20 = smov %s1685_s15  ;;  %s1981_s21 = smov %s1507_s22 }
 0x365   : > { %s1982_s22 = smov %s1984_s8  ;;  %21 = sbr.rel (!%p19_p5) target bundleno = 7 (0x7), region = 101 }
 0x36c   :  { %1049 = vsyncpa [#allocation4], 1 }
 0x36d   :  { %1051 = vsyncpa [#allocation4 + $0x1], 1 }
 0x36e   :  { %1052 = vsyncpa [#allocation7], 1 }
 0x36f   :  { %1053 = vsyncpa [#allocation5], 1 }
 0x370   :  { %1055 = vsyncpa [#allocation5 + $0x1], 1 }

</bundles_post_ra>
